<compile_context>
chip_gen: v6e
topology: v6e:2x2x1
jax: 0.10.0
libtpu: 0.0.40
codegen_flags: <defaults>
</compile_context>

<pallas_src>
import math
from functools import partial

import jax
import jax.numpy as jnp
from jax import lax
from jax.experimental import pallas as pl
from jax.experimental.pallas import tpu as pltpu

_LANE = 128


def _degree_rsqrt(a):
    """d = deg^-1/2 with deg_i = 0.5*(rowsum_i + colsum_i) + 1 (self-loop folded in).

    Only the (.., N, 1)/(.., 1, N) reduction results are promoted to f32 (no N*N f32
    temporary). torch zeroes only D == inf (zero degree); NaN (negative degree) passes
    through, matching the reference.
    """
    row = jnp.sum(a, axis=-1, keepdims=True).astype(jnp.float32)
    col = jnp.sum(a, axis=-2, keepdims=True).astype(jnp.float32)
    deg = 0.5 * (row + jnp.swapaxes(col, -1, -2)) + 1.0
    d = lax.rsqrt(deg)
    return jnp.where(jnp.isinf(d), 0.0, d)


def _gcn_flat_kernel(x_ref, adj_ref, w1_ref, w2_ref, out_ref, sup_ref, sup2_ref):
    """Whole-adjacency path. One grid step = one head x Bb batch items.

    x_ref:   (Bb, N, Fin)      adj_ref: (Bb, N, N)
    w*_ref:  (Fin, Fp)         out_ref: (Bb, N, Fp)
    sup*_ref:(Bb*N, Fp) f32 VMEM scratch     (Fp = lane-padded Fout)
    """
    bb, n, fin = x_ref.shape

    # One MXU pass per weight over all Bb*N rows: raises the MXU M dim from N to Bb*N and
    # amortizes weight staging across the whole block.
    xf = x_ref[...].reshape(bb * n, fin)
    sup_ref[...] = jnp.dot(xf, w1_ref[...], preferred_element_type=jnp.float32)
    sup2_ref[...] = jnp.dot(xf, w2_ref[...], preferred_element_type=jnp.float32)

    def body(i, carry):
        a = adj_ref[i]                                  # (N, N), native dtype -> MXU
        r0 = i * n
        if n % 8 == 0:                                  # static; true whenever bb > 1
            r0 = pl.multiple_of(r0, 8)
        s = sup_ref[pl.ds(r0, n), :]                    # (N, Fp) f32
        s2 = sup2_ref[pl.ds(r0, n), :]

        d = _degree_rsqrt(a)                            # (N, 1) f32

        # norm(A + I) @ S == d .* (A_sym @ (d .* S)) + d^2 .* S ,  A_sym = (A + A^T)/2.
        # A^T @ v via dot_general contracting A's axis 0 (no materialized transpose; if a
        # future Mosaic lowering inserts an XLU transpose here, symmetrize A with a VPU
        # add instead -- only relevant if the kernel ever becomes XLU-bound).
        # Exact for f32 inputs; for bf16 this rounds d*S to the MXU operand dtype.
        v = (d * s).astype(a.dtype)
        av = jnp.dot(a, v, preferred_element_type=jnp.float32)
        avt = lax.dot_general(a, v, (((0,), (0,)), ((), ())),
                              preferred_element_type=jnp.float32)
        out = d * (0.5 * (av + avt)) + (d * d) * s + s2
        out_ref[i] = out.astype(out_ref.dtype)
        return carry

    # fori_loop (not a Python unroll) bounds the live ranges of the per-item f32
    # temporaries; unroll<=2 keeps some scheduler visibility without Bb-fold vreg pressure.
    lax.fori_loop(0, bb, body, 0, unroll=min(2, bb))


def _gcn_rowtile_kernel(x_ref, arow_ref, acol_ref, d_ref, w1_ref, w2_ref, out_ref, v_ref):
    """Row-tiled large-N path. Grid (H, B, N // Tn); row axis innermost & "arbitrary".

    x_ref: (N, Fin)   arow_ref: (Tn, N)   acol_ref: (N, Tn)   d_ref: (N, 1) f32
    w*_ref: (Fin, Fp)   out_ref: (Tn, Fp)   v_ref: (N, Fp) scratch (x dtype)
    """
    r = pl.program_id(2)
    tn = out_ref.shape[0]
    d_all = d_ref[...]                                   # (N, 1) f32, resident

    # v = d .* (x @ W), computed once per (h, b) and reused by every row tile.
    @pl.when(r == 0)
    def _():
        s_full = jnp.dot(x_ref[...], w1_ref[...], preferred_element_type=jnp.float32)
        v_ref[...] = (d_all * s_full).astype(v_ref.dtype)

    row0 = pl.multiple_of(r * tn, tn)
    x_r = x_ref[pl.ds(row0, tn), :]                      # (Tn, Fin)
    d_r = d_ref[pl.ds(row0, tn), :]                      # (Tn, 1) f32

    v = v_ref[...]
    # A_sym[R, :] @ v = 0.5 * (A[R, :] @ v + A[:, R]^T @ v); the column block is
    # contracted along its axis 0, so no (N, Tn) transpose is materialized.
    av = jnp.dot(arow_ref[...], v, preferred_element_type=jnp.float32)
    avt = lax.dot_general(acol_ref[...], v, (((0,), (0,)), ((), ())),
                          preferred_element_type=jnp.float32)
    s_r = jnp.dot(x_r, w1_ref[...], preferred_element_type=jnp.float32)
    s2_r = jnp.dot(x_r, w2_ref[...], preferred_element_type=jnp.float32)
    out = d_r * (0.5 * (av + avt)) + (d_r * d_r) * s_r + s2_r
    out_ref[...] = out.astype(out_ref.dtype)


def _vmem_capacity_bytes():
    try:
        return int(pltpu.get_tpu_info().vmem_capacity_bytes)
    except Exception:
        return 64 * 1024 * 1024            # conservative (v7x-sized) fallback


def _vmem_limit(step_bytes, cap):
    # Derived from actual block sizes + headroom, clamped to <= half the physical VMEM of
    # this generation (v5e/v6e: 128 MiB, v7x: 64 MiB) so compiler scratch/spill space is
    # never squeezed out; never below the 32 MiB default scoped limit.
    need = int(step_bytes * 1.25) + (4 << 20)
    return max(32 << 20, min(need, cap // 2))


@partial(jax.jit, static_argnames=("row_tile",))
def graph_convolution(x, adj, weight, weight2, *, row_tile=None):
    """x: (B,H,N,Fin), adj: (B,H,N,N), weight/weight2: (H,Fin,Fout) -> (B,H,N,Fout).

    row_tile: optional static int forcing the row-tiled large-N kernel with that tile
    (must divide N and be a multiple of 128); None -> chosen from the VMEM budget.
    """
    B, H, N, Fin = x.shape
    Fout = weight.shape[-1]

    x_is = jnp.dtype(x.dtype).itemsize
    a_is = jnp.dtype(adj.dtype).itemsize
    w_is = jnp.dtype(weight.dtype).itemsize
    cap = _vmem_capacity_bytes()

    # Lane-dense outputs/intermediates: pad per-head Fout up to a 128-lane multiple so
    # MXU outputs and HBM stores are unmasked (same MXU tile count either way). Gated on
    # N >= Fp so the padded output bytes stay below the adjacency bytes per row.
    Fp = Fout
    if Fout % _LANE != 0:
        cand = ((Fout + _LANE - 1) // _LANE) * _LANE
        if N >= cand:
            Fp = cand
    if Fp != Fout:
        w1 = jnp.pad(weight, ((0, 0), (0, 0), (0, Fp - Fout)))
        w2 = jnp.pad(weight2, ((0, 0), (0, 0), (0, Fp - Fout)))
    else:
        w1, w2 = weight, weight2

    # Per-grid-step VMEM estimate for the whole-adjacency kernel with bb items per step:
    # 2x the blocks (double-buffered pipeline) + resident f32 support scratch + the f32
    # temporaries of one loop iteration (av/avt/out/v).
    def flat_step_bytes(bb):
        blocks = bb * N * (N * a_is + Fin * x_is + Fp * x_is) + 2 * Fin * Fp * w_is
        scratch = 2 * bb * N * Fp * 4
        temps = 4 * N * Fp * 4
        return 2 * blocks + scratch + temps

    # Large-N path: the (N, N) adjacency no longer fits a sane VMEM budget -> row-tile it.
    if row_tile is None and N % _LANE == 0 and flat_step_bytes(1) > (2 * cap) // 5:
        row_tile = max(t for t in (512, 256, _LANE) if N % t == 0)

    if row_tile is not None:
        tn = int(row_tile)
        assert N % tn == 0 and tn % _LANE == 0, "row_tile must divide N, multiple of 128"

        # The symmetrized degree needs both row and column sums of A, which a single row
        # tile cannot provide -> precompute d once in the wrapper (one extra HBM pass).
        # TODO(synk): fold this pass into the kernel with a 2-sweep grid if the extra
        # adjacency read ever shows up at the HBM roofline.
        d = _degree_rsqrt(adj)                                       # (B, H, N, 1) f32

        blocks = (2 * tn * N * a_is + N * Fin * x_is + N * 4
                  + 2 * Fin * Fp * w_is + tn * Fp * x_is)
        step = 2 * blocks + N * Fp * x_is + 4 * tn * Fp * 4
        limit = _vmem_limit(step, cap)

        out = pl.pallas_call(
            _gcn_rowtile_kernel,
            out_shape=jax.ShapeDtypeStruct((B, H, N, Fp), x.dtype),
            grid_spec=pltpu.PrefetchScalarGridSpec(
                num_scalar_prefetch=0,
                grid=(H, B, N // tn),
                in_specs=[
                    pl.BlockSpec((None, None, N, Fin), lambda h, b, r: (b, h, 0, 0)),  # x
                    pl.BlockSpec((None, None, tn, N), lambda h, b, r: (b, h, r, 0)),   # A rows
                    pl.BlockSpec((None, None, N, tn), lambda h, b, r: (b, h, 0, r)),   # A cols
                    pl.BlockSpec((None, None, N, 1), lambda h, b, r: (b, h, 0, 0)),    # d
                    pl.BlockSpec((None, Fin, Fp), lambda h, b, r: (h, 0, 0)),          # W
                    pl.BlockSpec((None, Fin, Fp), lambda h, b, r: (h, 0, 0)),          # W2
                ],
                out_specs=pl.BlockSpec((None, None, tn, Fp), lambda h, b, r: (b, h, r, 0)),
                scratch_shapes=[pltpu.VMEM((N, Fp), x.dtype)],
            ),
            compiler_params=pltpu.CompilerParams(
                dimension_semantics=("parallel", "parallel", "arbitrary"),
                vmem_limit_bytes=limit,
            ),
        )(x, adj, adj, d, w1, w2)
        return out[..., :Fout] if Fp != Fout else out

    # Collapse the batch axis into one grid step only when the honest VMEM estimate
    # (double buffering + scratch + temps) is small -- per-grid-step overhead (~0.35us)
    # dominates tiny problems -- the Bb*N rows reshape cleanly onto sublane tiles, and
    # there is still >= 2-way grid parallelism for the two TensorCores of a v7x chip.
    collapse = (B <= 8 and N % 8 == 0 and flat_step_bytes(B) <= (8 << 20)
                and (H >= 2 or B == 1))

    if collapse:
        bb = B
        grid = (H,)
        dims = ("parallel",)
        x_spec = pl.BlockSpec((B, None, N, Fin), lambda h: (0, h, 0, 0))
        adj_spec = pl.BlockSpec((B, None, N, N), lambda h: (0, h, 0, 0))
        w_spec = pl.BlockSpec((None, Fin, Fp), lambda h: (h, 0, 0))
        out_spec = pl.BlockSpec((B, None, N, Fp), lambda h: (0, h, 0, 0))
    else:
        bb = 1
        grid = (H, B)                      # H outermost: weights stay resident across B
        dims = ("parallel", "parallel")
        x_spec = pl.BlockSpec((1, None, N, Fin), lambda h, b: (b, h, 0, 0))
        adj_spec = pl.BlockSpec((1, None, N, N), lambda h, b: (b, h, 0, 0))
        w_spec = pl.BlockSpec((None, Fin, Fp), lambda h, b: (h, 0, 0))
        out_spec = pl.BlockSpec((1, None, N, Fp), lambda h, b: (b, h, 0, 0))

    limit = _vmem_limit(flat_step_bytes(bb), cap)
    out = pl.pallas_call(
        _gcn_flat_kernel,
        out_shape=jax.ShapeDtypeStruct((B, H, N, Fp), x.dtype),
        grid_spec=pltpu.PrefetchScalarGridSpec(
            num_scalar_prefetch=0,
            grid=grid,
            in_specs=[x_spec, adj_spec, w_spec, w_spec],
            out_specs=out_spec,
            scratch_shapes=[pltpu.VMEM((bb * N, Fp), jnp.float32),
                            pltpu.VMEM((bb * N, Fp), jnp.float32)],
        ),
        compiler_params=pltpu.CompilerParams(
            dimension_semantics=dims,
            vmem_limit_bytes=limit,
        ),
    )(x, adj, w1, w2)
    return out[..., :Fout] if Fp != Fout else out


def _reference(x, adj, weight, weight2):
    """Pure-JAX mirror of the PyTorch forward."""
    B, H, N, _ = x.shape
    hi = lax.Precision.HIGHEST
    a = adj.reshape(B * H, N, N)
    a = a + jnp.eye(N, dtype=a.dtype)
    a = (a + jnp.swapaxes(a, 1, 2)) / 2
    d = jnp.sum(a, axis=-1) ** (-0.5)
    d = jnp.where(jnp.isinf(d), 0.0, d)
    norm_a = (d[:, :, None] * a * d[:, None, :]).reshape(B, H, N, N)
    support = jnp.einsum("bhnf,hfo->bhno", x, weight, precision=hi)
    support2 = jnp.einsum("bhnf,hfo->bhno", x, weight2, precision=hi)
    return jnp.einsum("bhnm,bhmo->bhno", norm_a, support, precision=hi) + support2


def _xavier_uniform(key, h, fin, fout):
    # torch xavier_uniform_ fan calculation for 3-D (head, fin, fout) tensors.
    fan_in, fan_out = fin * fout, fin * fout
    bound = math.sqrt(6.0 / (fan_in + fan_out))
    return jax.random.uniform(key, (h, fin, fout), minval=-bound, maxval=bound,
                              dtype=jnp.float32)


if __name__ == "__main__":
    key = jax.random.PRNGKey(0)
    k = jax.random.split(key, 8)

    # --- Config 1: module defaults (in_features=16, head_num=2, out_features=16
    #     -> per-head Fin = Fout = 8); collapsed-grid whole-adjacency path. ---
    B, H, N, Fin, Fout = 2, 2, 16, 8, 8
    x = jax.random.normal(k[0], (B, H, N, Fin), dtype=jnp.float32)
    adj = jax.random.uniform(k[1], (B, H, N, N), dtype=jnp.float32)
    w1 = _xavier_uniform(k[2], H, Fin, Fout)
    w2 = _xavier_uniform(k[3], H, Fin, Fout)

    out = jax.block_until_ready(graph_convolution(x, adj, w1, w2))
    ref = _reference(x, adj, w1, w2)
    assert out.shape == (B, H, N, Fout)
    assert jnp.allclose(out, ref, atol=1e-5, rtol=1e-5), float(jnp.max(jnp.abs(out - ref)))

    # --- Config 2: exercise the row-tiled large-N kernel + lane-padded (Fp=128) output. ---
    B2, H2, N2, Fin2, Fout2 = 1, 2, 256, 8, 8
    x2 = jax.random.normal(k[4], (B2, H2, N2, Fin2), dtype=jnp.float32)
    adj2 = jax.random.uniform(k[5], (B2, H2, N2, N2), dtype=jnp.float32)
    w1b = _xavier_uniform(k[6], H2, Fin2, Fout2)
    w2b = _xavier_uniform(k[7], H2, Fin2, Fout2)

    out2 = jax.block_until_ready(graph_convolution(x2, adj2, w1b, w2b, row_tile=128))
    ref2 = _reference(x2, adj2, w1b, w2b)
    assert out2.shape == (B2, H2, N2, Fout2)
    assert jnp.allclose(out2, ref2, atol=1e-4, rtol=1e-4), float(jnp.max(jnp.abs(out2 - ref2)))

    print("KERNEL_OK")
</pallas_src>

<mosaic_0001>
module attributes {stable_mosaic.version = 11 : i64} {
  func.func @_gcn_flat_kernel(%arg0: i32, %arg1: memref<2x1x16x8xf32, #tpu.memory_space<vmem>>, %arg2: memref<2x1x16x16xf32, #tpu.memory_space<vmem>>, %arg3: memref<1x8x8xf32, #tpu.memory_space<vmem>>, %arg4: memref<1x8x8xf32, #tpu.memory_space<vmem>>, %arg5: memref<2x1x16x8xf32, #tpu.memory_space<vmem>>, %arg6: memref<32x8xf32, #tpu.memory_space<vmem>>, %arg7: memref<32x8xf32, #tpu.memory_space<vmem>>) attributes {dimension_semantics = [#tpu.dimension_semantics<parallel>], iteration_bounds = array<i64: 2>, scalar_prefetch = 0 : i64, scratch_operands = 2 : i64, tpu.core_type = #tpu.core_type<tc>, window_params = [{transform_indices = @transform_0, window_bounds = array<i64: 2, 1, 16, 8>}, {transform_indices = @transform_1, window_bounds = array<i64: 2, 1, 16, 16>}, {transform_indices = @transform_2, window_bounds = array<i64: 1, 8, 8>}, {transform_indices = @transform_3, window_bounds = array<i64: 1, 8, 8>}, {transform_indices = @transform_4, window_bounds = array<i64: 2, 1, 16, 8>}]} {
    %c0 = arith.constant 0 : index
    %c0_0 = arith.constant 0 : index
    %c0_1 = arith.constant 0 : index
    %c0_2 = arith.constant 0 : index
    %0 = vector.load %arg1[%c0, %c0_0, %c0_1, %c0_2] : memref<2x1x16x8xf32, #tpu.memory_space<vmem>>, vector<2x1x16x8xf32>
    %1 = vector.shape_cast %0 : vector<2x1x16x8xf32> to vector<2x16x8xf32>
    %2 = vector.shape_cast %1 : vector<2x16x8xf32> to vector<32x8xf32>
    %c0_3 = arith.constant 0 : index
    %c0_4 = arith.constant 0 : index
    %c0_5 = arith.constant 0 : index
    %3 = vector.load %arg3[%c0_3, %c0_4, %c0_5] : memref<1x8x8xf32, #tpu.memory_space<vmem>>, vector<1x8x8xf32>
    %4 = vector.shape_cast %3 : vector<1x8x8xf32> to vector<8x8xf32>
    %cst = arith.constant dense<0.000000e+00> : vector<32x8xf32>
    %5 = tpu.matmul %2, %4, %cst {dimension_numbers = #tpu.dot_dimension_numbers<[1], [0], [0], [1], [0, 0, 1, 1], [], []>} : vector<32x8xf32>, vector<8x8xf32>, vector<32x8xf32> -> vector<32x8xf32>
    %c0_6 = arith.constant 0 : index
    %c0_7 = arith.constant 0 : index
    %6 = vector.load %arg6[%c0_6, %c0_7] : memref<32x8xf32, #tpu.memory_space<vmem>>, vector<32x8xf32>
    tpu.vector_store %arg6[%c0_6, %c0_7], %5 {strides = array<i32>} : memref<32x8xf32, #tpu.memory_space<vmem>>, vector<32x8xf32>,
    %c0_8 = arith.constant 0 : index
    %c0_9 = arith.constant 0 : index
    %c0_10 = arith.constant 0 : index
    %7 = vector.load %arg4[%c0_8, %c0_9, %c0_10] : memref<1x8x8xf32, #tpu.memory_space<vmem>>, vector<1x8x8xf32>
    %8 = vector.shape_cast %7 : vector<1x8x8xf32> to vector<8x8xf32>
    %cst_11 = arith.constant dense<0.000000e+00> : vector<32x8xf32>
    %9 = tpu.matmul %2, %8, %cst_11 {dimension_numbers = #tpu.dot_dimension_numbers<[1], [0], [0], [1], [0, 0, 1, 1], [], []>} : vector<32x8xf32>, vector<8x8xf32>, vector<32x8xf32> -> vector<32x8xf32>
    %c0_12 = arith.constant 0 : index
    %c0_13 = arith.constant 0 : index
    %10 = vector.load %arg7[%c0_12, %c0_13] : memref<32x8xf32, #tpu.memory_space<vmem>>, vector<32x8xf32>
    tpu.vector_store %arg7[%c0_12, %c0_13], %9 {strides = array<i32>} : memref<32x8xf32, #tpu.memory_space<vmem>>, vector<32x8xf32>,
    %c0_i32 = arith.constant 0 : i32
    %11 = arith.index_cast %c0_i32 : i32 to index
    %c0_14 = arith.constant 0 : index
    %c0_15 = arith.constant 0 : index
    %c0_16 = arith.constant 0 : index
    %12 = vector.load %arg2[%11, %c0_14, %c0_15, %c0_16] : memref<2x1x16x16xf32, #tpu.memory_space<vmem>>, vector<1x1x16x16xf32>
    %13 = vector.shape_cast %12 : vector<1x1x16x16xf32> to vector<16x16xf32>
    %c16_i32 = arith.constant 16 : i32
    %14 = arith.muli %c0_i32, %c16_i32 : i32
    %15 = tpu.assume_multiple %14, 8 : i32
    %16 = arith.index_cast %15 : i32 to index
    %c0_17 = arith.constant 0 : index
    %17 = vector.load %arg6[%16, %c0_17] : memref<32x8xf32, #tpu.memory_space<vmem>>, vector<16x8xf32>
    %18 = arith.index_cast %15 : i32 to index
    %c0_18 = arith.constant 0 : index
    %19 = vector.load %arg7[%18, %c0_18] : memref<32x8xf32, #tpu.memory_space<vmem>>, vector<16x8xf32>
    %cst_19 = arith.constant dense<0.000000e+00> : vector<16xf32>
    %20 = vector.multi_reduction <add>, %13, %cst_19 [1] : vector<16x16xf32> to vector<16xf32>
    %21 = vector.shape_cast %20 : vector<16xf32> to vector<16x1xf32>
    %cst_20 = arith.constant dense<0.000000e+00> : vector<16xf32>
    %22 = vector.multi_reduction <add>, %13, %cst_20 [0] : vector<16x16xf32> to vector<16xf32>
    %23 = vector.shape_cast %22 : vector<16xf32> to vector<1x16xf32>
    %24 = tpu.transpose %23, [1, 0] : vector<1x16xf32> -> vector<16x1xf32>
    %25 = arith.addf %21, %24 : vector<16x1xf32>
    %cst_21 = arith.constant 5.000000e-01 : f32
    %26 = vector.broadcast %cst_21 : f32 to vector<16x1xf32>
    %27 = arith.mulf %26, %25 : vector<16x1xf32>
    %cst_22 = arith.constant 1.000000e+00 : f32
    %28 = vector.broadcast %cst_22 : f32 to vector<16x1xf32>
    %29 = arith.addf %27, %28 : vector<16x1xf32>
    %30 = math.rsqrt %29 : vector<16x1xf32>
    %31 = math.absf %30 : vector<16x1xf32>
    %cst_23 = arith.constant 0x7F800000 : f32
    %32 = vector.broadcast %cst_23 : f32 to vector<16x1xf32>
    %33 = arith.cmpf oeq, %31, %32 : vector<16x1xf32>
    %cst_24 = arith.constant 0.000000e+00 : f32
    %34 = vector.broadcast %cst_24 : f32 to vector<16x1xf32>
    %35 = arith.select %33, %34, %30 : vector<16x1xi1>, vector<16x1xf32>
    %36 = vector.broadcast %35 : vector<16x1xf32> to vector<16x8xf32>
    %37 = arith.mulf %36, %17 : vector<16x8xf32>
    %cst_25 = arith.constant dense<0.000000e+00> : vector<16x8xf32>
    %38 = tpu.matmul %13, %37, %cst_25 {dimension_numbers = #tpu.dot_dimension_numbers<[1], [0], [0], [1], [0, 0, 1, 1], [], []>} : vector<16x16xf32>, vector<16x8xf32>, vector<16x8xf32> -> vector<16x8xf32>
    %cst_26 = arith.constant dense<0.000000e+00> : vector<16x8xf32>
    %39 = tpu.matmul %13, %37, %cst_26 {dimension_numbers = #tpu.dot_dimension_numbers<[0], [0], [1], [1], [0, 1, 1, 1], [], []>} : vector<16x16xf32>, vector<16x8xf32>, vector<16x8xf32> -> vector<16x8xf32>
    %40 = arith.addf %38, %39 : vector<16x8xf32>
    %cst_27 = arith.constant 5.000000e-01 : f32
    %41 = vector.broadcast %cst_27 : f32 to vector<16x8xf32>
    %42 = arith.mulf %41, %40 : vector<16x8xf32>
    %43 = vector.broadcast %35 : vector<16x1xf32> to vector<16x8xf32>
    %44 = arith.mulf %43, %42 : vector<16x8xf32>
    %45 = arith.mulf %35, %35 : vector<16x1xf32>
    %46 = vector.broadcast %45 : vector<16x1xf32> to vector<16x8xf32>
    %47 = arith.mulf %46, %17 : vector<16x8xf32>
    %48 = arith.addf %44, %47 : vector<16x8xf32>
    %49 = arith.addf %48, %19 : vector<16x8xf32>
    %50 = arith.index_cast %c0_i32 : i32 to index
    %c0_28 = arith.constant 0 : index
    %c0_29 = arith.constant 0 : index
    %c0_30 = arith.constant 0 : index
    %51 = vector.load %arg5[%50, %c0_28, %c0_29, %c0_30] : memref<2x1x16x8xf32, #tpu.memory_space<vmem>>, vector<1x1x16x8xf32>
    %52 = vector.shape_cast %51 : vector<1x1x16x8xf32> to vector<16x8xf32>
    %53 = vector.shape_cast %49 : vector<16x8xf32> to vector<1x1x16x8xf32>
    tpu.vector_store %arg5[%50, %c0_28, %c0_29, %c0_30], %53 {strides = array<i32>} : memref<2x1x16x8xf32, #tpu.memory_space<vmem>>, vector<1x1x16x8xf32>,
    %c1_i32 = arith.constant 1 : i32
    %54 = arith.index_cast %c1_i32 : i32 to index
    %c0_31 = arith.constant 0 : index
    %c0_32 = arith.constant 0 : index
    %c0_33 = arith.constant 0 : index
    %55 = vector.load %arg2[%54, %c0_31, %c0_32, %c0_33] : memref<2x1x16x16xf32, #tpu.memory_space<vmem>>, vector<1x1x16x16xf32>
    %56 = vector.shape_cast %55 : vector<1x1x16x16xf32> to vector<16x16xf32>
    %c16_i32_34 = arith.constant 16 : i32
    %57 = arith.muli %c1_i32, %c16_i32_34 : i32
    %58 = tpu.assume_multiple %57, 8 : i32
    %59 = arith.index_cast %58 : i32 to index
    %c0_35 = arith.constant 0 : index
    %60 = vector.load %arg6[%59, %c0_35] : memref<32x8xf32, #tpu.memory_space<vmem>>, vector<16x8xf32>
    %61 = arith.index_cast %58 : i32 to index
    %c0_36 = arith.constant 0 : index
    %62 = vector.load %arg7[%61, %c0_36] : memref<32x8xf32, #tpu.memory_space<vmem>>, vector<16x8xf32>
    %cst_37 = arith.constant dense<0.000000e+00> : vector<16xf32>
    %63 = vector.multi_reduction <add>, %56, %cst_37 [1] : vector<16x16xf32> to vector<16xf32>
    %64 = vector.shape_cast %63 : vector<16xf32> to vector<16x1xf32>
    %cst_38 = arith.constant dense<0.000000e+00> : vector<16xf32>
    %65 = vector.multi_reduction <add>, %56, %cst_38 [0] : vector<16x16xf32> to vector<16xf32>
    %66 = vector.shape_cast %65 : vector<16xf32> to vector<1x16xf32>
    %67 = tpu.transpose %66, [1, 0] : vector<1x16xf32> -> vector<16x1xf32>
    %68 = arith.addf %64, %67 : vector<16x1xf32>
    %cst_39 = arith.constant 5.000000e-01 : f32
    %69 = vector.broadcast %cst_39 : f32 to vector<16x1xf32>
    %70 = arith.mulf %69, %68 : vector<16x1xf32>
    %cst_40 = arith.constant 1.000000e+00 : f32
    %71 = vector.broadcast %cst_40 : f32 to vector<16x1xf32>
    %72 = arith.addf %70, %71 : vector<16x1xf32>
    %73 = math.rsqrt %72 : vector<16x1xf32>
    %74 = math.absf %73 : vector<16x1xf32>
    %cst_41 = arith.constant 0x7F800000 : f32
    %75 = vector.broadcast %cst_41 : f32 to vector<16x1xf32>
    %76 = arith.cmpf oeq, %74, %75 : vector<16x1xf32>
    %cst_42 = arith.constant 0.000000e+00 : f32
    %77 = vector.broadcast %cst_42 : f32 to vector<16x1xf32>
    %78 = arith.select %76, %77, %73 : vector<16x1xi1>, vector<16x1xf32>
    %79 = vector.broadcast %78 : vector<16x1xf32> to vector<16x8xf32>
    %80 = arith.mulf %79, %60 : vector<16x8xf32>
    %cst_43 = arith.constant dense<0.000000e+00> : vector<16x8xf32>
    %81 = tpu.matmul %56, %80, %cst_43 {dimension_numbers = #tpu.dot_dimension_numbers<[1], [0], [0], [1], [0, 0, 1, 1], [], []>} : vector<16x16xf32>, vector<16x8xf32>, vector<16x8xf32> -> vector<16x8xf32>
    %cst_44 = arith.constant dense<0.000000e+00> : vector<16x8xf32>
    %82 = tpu.matmul %56, %80, %cst_44 {dimension_numbers = #tpu.dot_dimension_numbers<[0], [0], [1], [1], [0, 1, 1, 1], [], []>} : vector<16x16xf32>, vector<16x8xf32>, vector<16x8xf32> -> vector<16x8xf32>
    %83 = arith.addf %81, %82 : vector<16x8xf32>
    %cst_45 = arith.constant 5.000000e-01 : f32
    %84 = vector.broadcast %cst_45 : f32 to vector<16x8xf32>
    %85 = arith.mulf %84, %83 : vector<16x8xf32>
    %86 = vector.broadcast %78 : vector<16x1xf32> to vector<16x8xf32>
    %87 = arith.mulf %86, %85 : vector<16x8xf32>
    %88 = arith.mulf %78, %78 : vector<16x1xf32>
    %89 = vector.broadcast %88 : vector<16x1xf32> to vector<16x8xf32>
    %90 = arith.mulf %89, %60 : vector<16x8xf32>
    %91 = arith.addf %87, %90 : vector<16x8xf32>
    %92 = arith.addf %91, %62 : vector<16x8xf32>
    %93 = arith.index_cast %c1_i32 : i32 to index
    %c0_46 = arith.constant 0 : index
    %c0_47 = arith.constant 0 : index
    %c0_48 = arith.constant 0 : index
    %94 = vector.load %arg5[%93, %c0_46, %c0_47, %c0_48] : memref<2x1x16x8xf32, #tpu.memory_space<vmem>>, vector<1x1x16x8xf32>
    %95 = vector.shape_cast %94 : vector<1x1x16x8xf32> to vector<16x8xf32>
    %96 = vector.shape_cast %92 : vector<16x8xf32> to vector<1x1x16x8xf32>
    tpu.vector_store %arg5[%93, %c0_46, %c0_47, %c0_48], %96 {strides = array<i32>} : memref<2x1x16x8xf32, #tpu.memory_space<vmem>>, vector<1x1x16x8xf32>,
    %c2_i32 = arith.constant 2 : i32
    return
  }
  func.func @transform_0(%arg0: i32) -> (i32, i32, i32, i32) {
    %c0_i32 = arith.constant 0 : i32
    %c0_i32_0 = arith.constant 0 : i32
    %c0_i32_1 = arith.constant 0 : i32
    %c0_i32_2 = arith.constant 0 : i32
    return %c0_i32, %arg0, %c0_i32_0, %c0_i32_1 : i32, i32, i32, i32
  }
  func.func @transform_1(%arg0: i32) -> (i32, i32, i32, i32) {
    %c0_i32 = arith.constant 0 : i32
    %c0_i32_0 = arith.constant 0 : i32
    %c0_i32_1 = arith.constant 0 : i32
    %c0_i32_2 = arith.constant 0 : i32
    return %c0_i32, %arg0, %c0_i32_0, %c0_i32_1 : i32, i32, i32, i32
  }
  func.func @transform_2(%arg0: i32) -> (i32, i32, i32) {
    %c0_i32 = arith.constant 0 : i32
    %c0_i32_0 = arith.constant 0 : i32
    %c0_i32_1 = arith.constant 0 : i32
    return %arg0, %c0_i32, %c0_i32_0 : i32, i32, i32
  }
  func.func @transform_3(%arg0: i32) -> (i32, i32, i32) {
    %c0_i32 = arith.constant 0 : i32
    %c0_i32_0 = arith.constant 0 : i32
    %c0_i32_1 = arith.constant 0 : i32
    return %arg0, %c0_i32, %c0_i32_0 : i32, i32, i32
  }
  func.func @transform_4(%arg0: i32) -> (i32, i32, i32, i32) {
    %c0_i32 = arith.constant 0 : i32
    %c0_i32_0 = arith.constant 0 : i32
    %c0_i32_1 = arith.constant 0 : i32
    %c0_i32_2 = arith.constant 0 : i32
    return %c0_i32, %arg0, %c0_i32_0, %c0_i32_1 : i32, i32, i32, i32
  }
}

</mosaic_0001>

<bundles_post_ra>
// kernel: graph_convolution.1
= control target key start
LH: loop header
LB: loop body
LE: loop exit
PB: predicated region body
PF: predicated region fallthrough
CT: control target
= control target key end

     0   :  { %s1487_s15 = smov 0   ;;  %s1489_s16 = smov 0   ;;  %s1666_s0 = inlined_call_operand.vmem [shape: f32[2,2,16,8], index: 0, kind: input, shape index: {}]   ;;  %s1667_s1 = inlined_call_operand.vmem [shape: f32[2,2,16,16], index: 1, kind: input, shape index: {}]   ;;  %s1668_s2 = inlined_call_operand.vmem [shape: f32[2,8,8], index: 2, kind: input, shape index: {}]   ;;  %s1669_s3 = inlined_call_operand.vmem [shape: f32[2,8,8], index: 3, kind: input, shape index: {}]   ;;  %s1670_s4 = inlined_call_operand.vmem [shape: f32[2,2,16,8], index: 4, kind: output, shape index: {}]  }
   0x1   :  { %s1491_s17 = smov 0  }
   0x2 LB: > { %s1503_s18 = sadd.s32 4294967295, %s1459_s17   ;;  %s1506_s19 = sadd.s32 1, %s1459_s17   ;;  %s1459_s17 = sphi %s1491_s17, %s1675_s17   ;;  %s1455_s16 = sphi %s1489_s16, %s1674_s16   ;;  %s1451_s15 = sphi %s1487_s15, %s1673_s15  }
   0x3   : > { %s18_s20 = ssub.s32 %s1459_s17, %s1506_s19  ;;  %s21_s21 = sadd.s32 1, %s1455_s16 }
   0x4   : > { %p19_p0 = scmp.eq.s32.totalorder %s18_s20, 0  ;;  %p28_p1 = scmp.ne.s32.totalorder %s1455_s16, %s1451_s15 }
   0x5   : > { %p29_p2 = scmp.eq.s32.totalorder %s1459_s17, 0  ;;  %p136_p3 = scmp.eq.s32.totalorder %s1503_s18, 1 }
   0x6   : > { %s1516_s22 = scalar_select %p19_p0, %s1455_s16, %s21_s21  }
   0x7   : > { %p1518_p4 = por %p29_p2, %p28_p1  ;;  %p1522_p5 = por %p136_p3, %p28_p1 }
   0x8   : > { %p1290_p6 = scmp.ge.s32.totalorder %s1459_s17, 2 }
   0xa   : > { %158 = sbr.rel (%p1290_p6) target bundleno = 27 (0x1b), region = 16 }
   0xf   : > { %161 = sbr.rel (!%p1518_p4) target bundleno = 21 (0x15), region = 20  ;;  %s163_s25 = sand.u32 (%p1518_p4), 1, %s1455_s16  }
  0x10   : > { %s1328_s26 = sshll.u32 (%p1518_p4), %s1459_s17, 4  ;;  %s1291_s27 = sshll.u32 (%p1518_p4), %s163_s25, 5 }
  0x11   : > { %s168_s30 = scalar_lea.vmem (%p1518_p4), %s1666_s0, %s1328_s26  ;;  %s165_s5 = scalar_lea.vmem (%p1518_p4), [#allocation4], %s1291_s27 }
  0x12   : > { %v203_v0 = vld [vmem:[%s168_s30] sm:$0xff] (%p1518_p4)  ;;  %v205_v1 = vld [vmem:[%s168_s30 + $0x8] sm:$0xff] (%p1518_p4) }
  0x13   : > { %v207_v2 = vld [vmem:[%s168_s30 + $0x20] sm:$0xff] (%p1518_p4)  ;;  %204 = vst [vmem:[%s165_s5] sm:$0xff] (%p1518_p4), %v203_v0  ;;  %206 = vst [vmem:[%s165_s5 + $0x8] sm:$0xff] (%p1518_p4), %v205_v1  ;;  %v209_v3 = vld [vmem:[%s168_s30 + $0x28] sm:$0xff] (%p1518_p4) }
  0x14   : > { %208 = vst [vmem:[%s165_s5 + $0x10] sm:$0xff] %v207_v2  ;;  %210 = vst [vmem:[%s165_s5 + $0x18] sm:$0xff] %v209_v3 }
  0x15 PF: > { %216 = sbr.rel (!%p1518_p4) target bundleno = 27 (0x1b), region = 58  ;;  %s218_s6 = sand.u32 (%p1518_p4), 1, %s1455_s16  }
  0x16   : > { %s1329_s7 = sshll.u32 (%p1518_p4), %s1459_s17, 4  ;;  %s1294_s8 = sshll.u32 (%p1518_p4), %s218_s6, 5 }
  0x17   : > { %s223_s11 = scalar_lea.vmem (%p1518_p4), %s1667_s1, %s1329_s7  ;;  %s220_s12 = scalar_lea.vmem (%p1518_p4), [#allocation5], %s1294_s8 }
  0x18   : > { %v258_v4 = vld [vmem:[%s223_s11] sm:$0xff] (%p1518_p4)  ;;  %v260_v5 = vld [vmem:[%s223_s11 + $0x8] sm:$0xff] (%p1518_p4) }
  0x19   : > { %v262_v6 = vld [vmem:[%s223_s11 + $0x20] sm:$0xff] (%p1518_p4)  ;;  %259 = vst [vmem:[%s220_s12] sm:$0xff] (%p1518_p4), %v258_v4  ;;  %261 = vst [vmem:[%s220_s12 + $0x8] sm:$0xff] (%p1518_p4), %v260_v5  ;;  %v264_v7 = vld [vmem:[%s223_s11 + $0x28] sm:$0xff] (%p1518_p4) }
  0x1a   : > { %263 = vst [vmem:[%s220_s12 + $0x10] sm:$0xff] %v262_v6  ;;  %265 = vst [vmem:[%s220_s12 + $0x18] sm:$0xff] %v264_v7 }
  0x1b PF: > { %p1297_p7 = scmp.ge.s32.totalorder %s1459_s17, 1  ;;  %p284_p8 = scmp.lt.s32.totalorder %s1459_s17, 3 }
  0x1d   : > { %p285_p9 = pnand %p1297_p7, %p284_p8 }
  0x1e   : > { %s291_s13 = sand.u32 (!%p285_p9), 1, %s1451_s15   ;;  %p334_p10 = scmp.lt.s32.totalorder (!%p285_p9), %s1503_s18, 1 }
  0x1f   : > { %288 = sbr.rel (%p285_p9) target bundleno = 634 (0x27a), region = 104  ;;  %s1545_s14 = sshll.u32 (!%p285_p9), %s291_s13, 5 }
  0x20   : > { %s300_s20 = scalar_lea.vmem (!%p285_p9), [#allocation5], %s1545_s14  ;;  %s293_s21 = scalar_lea.vmem (!%p285_p9), [#allocation4], %s1545_s14 }
  0x21   : > { %s1633_s30 = scalar_lea.vmem (!%p285_p9), [#allocation6], %s1545_s14 }
  0x24   : > { %vm545_vm0 = vcmask 130048   ;;  %v1548_v8 = vld [vmem:[%s300_s20 + $0x18] sm:$0xff]  ;;  %v1550_v9 = vld [vmem:[%s300_s20 + $0x8] sm:$0xff]  ;;  %v1552_v10 = vld [vmem:[%s300_s20 + $0x10] sm:$0xff]  ;;  %s1555_s17 = scalar_select %p334_p10, %s1503_s18, 1  ;;  %vm347_vm1 = vcmask 64512  }
  0x25   : > { %v847_v11 = vsel %vm545_vm0, %v1548_v8, 0.0  ;;  %v549_v12 = vsel %vm545_vm0, %v1550_v9, 0.0  ;;  %v1561_v13 = vld [vmem:[%s300_s20] sm:$0xff]  ;;  %v844_v15 = vsel %vm545_vm0, %v1552_v10, 0.0  ;;  %v1576_v18 = vld [vmem:[%s293_s21 + $0x8] sm:$0xff]  ;;  %v1578_v19 = vld [vmem:[%s293_s21 + $0x10] sm:$0xff] }
  0x26   : > { %848 = vadd.xlane.f32.xlu1 %v847_v11  ;;  %550 = vadd.xlane.f32.xlu0 %v549_v12  ;;  %s1301_s15 = sshll.u32 %s1555_s17, 3  ;;  %v342_v14 = vld [vmem:[%s293_s21] sm:$0xff]  ;;  %v546_v16 = vsel %vm545_vm0, %v1561_v13, 0.0  ;;  %v1584_v20 = vld [vmem:[%s293_s21 + $0x18] sm:$0xff]  ;;  %v850_v23 = vadd.f32 %v847_v11, %v844_v15  ;;  %v1461_v35 = vmov 0   ;;  %s1330_s5 = sshll.u32 (%p1522_p5), %s1503_s18, 4 }
  0x27   : > { %s337_s26 = scalar_lea.vmem %s1668_s2, %s1301_s15  ;;  %1359 = vmatprep.mubr.msk.f32.mxu0 %vm347_vm1, %v342_v14  ;;  %1367 = vmatprep.mubr.msk.f32.mxu1 %vm347_vm1, %v342_v14  ;;  %v552_v21 = vadd.f32 %v549_v12, %v546_v16  ;;  %s341_s29 = scalar_lea.vmem %s1669_s3, %s1301_s15 }
  0x28   : > { %v346_v17 = vld [vmem:[%s337_s26] sm:$0xff]  ;;  %v851_v25 = vrot.slane %v850_v23, 4  ;;  %s1143_s8 = scalar_lea.vmem (%p1522_p5), %s1670_s4, %s1330_s5 }
  0x29   : > { %1357 = vmatprep.subr.mxu0 %v346_v17  ;;  %v553_v22 = vrot.slane %v552_v21, 4  ;;  %v449_v58 = vld [vmem:[%s341_s29] sm:$0xff] }
  0x2a   : > { %845 = vadd.xlane.f32.xlu1 %v844_v15  ;;  %547 = vadd.xlane.f32.xlu0 %v546_v16  ;;  %v852_v27 = vadd.f32 %v851_v25, %v850_v23 }
  0x2b   : > { %1358 = vmatpush3.msra.mxu0 %v346_v17  ;;  %v554_v24 = vadd.f32 %v553_v22, %v552_v21  ;;  %1365 = vmatprep.subr.mxu1 %v449_v58 }
  0x2c   : > { %1360 = vmatmul.mubr.msk.f32.vlgmr.msra.gmra.mxu0 %vm347_vm1, %v1576_v18  ;;  %v853_v29 = vrot.slane %v852_v27, 2  ;;  %1366 = vmatpush3.msra.mxu1 %v449_v58 }
  0x2d   : > { %1362 = vmatprep.mubr.msk.f32.mxu0 %vm347_vm1, %v1578_v19  ;;  %v555_v26 = vrot.slane %v554_v24, 2  ;;  %1368 = vmatmul.mubr.msk.f32.vlgmr.msra.gmra.mxu1 %vm347_vm1, %v1576_v18 }
  0x2e   : > { %v854_v31 = vadd.f32 %v853_v29, %v852_v27  ;;  %1370 = vmatprep.mubr.msk.f32.mxu1 %vm347_vm1, %v1578_v19 }
  0x2f   : > { %v556_v28 = vadd.f32 %v555_v26, %v554_v24 }
  0x30   : > { %1363 = vmatmul.mubr.msk.f32.gmra.mxu0 %vm347_vm1, %v1584_v20  ;;  %v855_v33 = vrot.slane %v854_v31, 1 }
  0x31   : > { %v557_v30 = vrot.slane %v556_v28, 1  ;;  %1371 = vmatmul.mubr.msk.f32.gmra.mxu1 %vm347_vm1, %v1584_v20 }
  0x32   : > { %v856_v34 = vadd.f32 %v855_v33, %v854_v31  ;;  %1384 = vmatprep.mubr.msk.f32.mxu1 %vm545_vm0, %v1561_v13 }
  0x33   : > { %v558_v32 = vadd.f32 %v557_v30, %v556_v28 }
  0x57   : > { %559 = vxpose.xlu0.b32.start.end [1/1] (short) (narrow) %v558_v32, 16 }
  0x5d   : > { %857 = vxpose.xlu1.b32.start.end [1/1] (short) (narrow) %v856_v34, 16 }
  0x7b   : > { %1428 = vset.pattern.permute.xlu1 %v1461_v35 }
  0x80   : > { %1427 = vset.pattern.permute.xlu0 %v1461_v35 }
  0xaf   : > { %v551_v36 = vpop.xlane.xlu0 %550  ;;  %v849_v37 = vpop.xlane.xlu1 %848 }
  0xb3   : > { %v548_v38 = vpop.xlane.xlu0 %547  ;;  %v846_v41 = vpop.xlane.xlu1 %845 }
  0xd3   : > { %v575_v39 = vpop.trf.xlu0 }
  0xd4   : > { %v591_v40 = vadd.f32 %v575_v39, %v548_v38 }
  0xd6   : > { %v593_v42 = vmul.f32 0.5, %v591_v40 }
  0xd7   : > { %v576_v43 = vpop.trf.xlu0 }
  0xd8   : > { %v595_v44 = vadd.f32 1.0, %v593_v42  ;;  %v592_v45 = vadd.f32 %v576_v43, %v551_v36 }
  0xd9   : > { %v873_v46 = vpop.trf.xlu1 }
  0xda   : > { %1429 = vrsqrt.f32 %v595_v44  ;;  %v594_v47 = vmul.f32 0.5, %v592_v45  ;;  %v889_v48 = vadd.f32 %v873_v46, %v846_v41 }
  0xdc   : > { %v596_v49 = vadd.f32 1.0, %v594_v47  ;;  %v891_v50 = vmul.f32 0.5, %v889_v48 }
  0xdd   : > { %v874_v51 = vpop.trf.xlu1 }
  0xde   : > { %1431 = vrsqrt.f32 %v596_v49  ;;  %v893_v52 = vadd.f32 1.0, %v891_v50  ;;  %v890_v53 = vadd.f32 %v874_v51, %v849_v37 }
  0xe0   : > { %v892_v54 = vmul.f32 0.5, %v890_v53  ;;  %1433 = vrsqrt.f32 %v893_v52 }
  0xe2   : > { %v894_v55 = vadd.f32 1.0, %v892_v54 }
  0xe4   : > { %1435 = vrsqrt.f32 %v894_v55 }
  0xe7   : > { %v1430_v56 = vpop.eup %1429 }
  0xe8   : > { %v599_v57 = vand.u32 2147483647, %v1430_v56 }
  0xea   : > { %vm601_vm2 = vcmp.eq.f32.partialorder %v599_v57, inf }
  0xeb   : > { %v1432_v59 = vpop.eup %1431  ;;  %v603_v60 = vsel %vm601_vm2, 0.0, %v1430_v56 }
  0xec   : > { %607 = vperm.xlu1 %1428, %v603_v60   ;;  %v600_v61 = vand.u32 2147483647, %v1432_v59  ;;  %v1361_v62 = vpop.f32.mrf.mxu0  ;;  %v815_v12 = vmul.f32 %v603_v60, %v603_v60 }
  0xed   : > { %446 = vst.msk [vmem:[#allocation2 + $0x8] sm:$0xff] %vm347_vm1, %v1361_v62  ;;  %v1434_v0 = vpop.eup %1433  ;;  %v1369_v30 = vpop.f32.mrf.mxu1 }
  0xee   : > { %vm602_vm3 = vcmp.eq.f32.partialorder %v600_v61, inf  ;;  %v426_v63 = vpop.f32.mrf.mxu0  ;;  %v897_v5 = vand.u32 2147483647, %v1434_v0  ;;  %536 = vst.msk [vmem:[#allocation3 + $0x8] sm:$0xff] %vm347_vm1, %v1369_v30 }
  0xef   : > { %v604_v1 = vsel %vm602_vm3, 0.0, %v1432_v59  ;;  %445 = vst.msk [vmem:[#allocation2] sm:$0xff] %vm347_vm1, %v426_v63  ;;  %v516_v31 = vpop.f32.mrf.mxu1 }
  0xf0   : > { %612 = vperm.xlu0 %1427, %v604_v1   ;;  %v1364_v2 = vpop.f32.mrf.mxu0  ;;  %vm899_vm5 = vcmp.eq.f32.partialorder %v897_v5, inf  ;;  %v816_v15 = vmul.f32 %v604_v1, %v604_v1  ;;  %535 = vst.msk [vmem:[#allocation3] sm:$0xff] %vm347_vm1, %v516_v31 }
  0xf1   : > { %v1436_v3 = vpop.eup %1435  ;;  %448 = vst.msk [vmem:[#allocation2 + $0x18] sm:$0xff] %vm347_vm1, %v1364_v2  ;;  %v901_v11 = vsel %vm899_vm5, 0.0, %v1434_v0 }
  0xf2   : > { %v898_v4 = vand.u32 2147483647, %v1436_v3  ;;  %v436_v6 = vpop.f32.mrf.mxu0  ;;  %v1113_v14 = vmul.f32 %v901_v11, %v901_v11 }
  0xf3   : > { %447 = vst.msk [vmem:[#allocation2 + $0x10] sm:$0xff] %vm347_vm1, %v436_v6 }
  0xf4   : > { %vm900_vm4 = vcmp.eq.f32.partialorder %v898_v4, inf  ;;  %v542_v17 = vld [vmem:[#allocation2 + $0x8] sm:$0xff] }
  0xf5   : > { %v902_v7 = vsel %vm900_vm4, 0.0, %v1436_v3  ;;  %v544_v45 = vld [vmem:[#allocation3 + $0x8] sm:$0xff] }
  0xf6   : > { %910 = vperm.xlu1 %1428, %v902_v7   ;;  %v1114_v16 = vmul.f32 %v902_v7, %v902_v7  ;;  %v541_v19 = vld [vmem:[#allocation2] sm:$0xff] }
  0xf7   : > { %v543_v49 = vld [vmem:[#allocation3] sm:$0xff] }
  0xf8   : > { %v1609_v22 = vld [vmem:[#allocation2 + $0x18] sm:$0xff] }
  0xfa   : > { %905 = vperm.xlu1 %1428, %v901_v11   ;;  %v1617_v25 = vld [vmem:[#allocation2 + $0x10] sm:$0xff] }
 0x10e   : > { %617 = vxpose.xlu0.b32.start [1/2] (short) (narrow) %v1561_v13, 16 }
 0x112   : > { %618 = vxpose.xlu0.b32.end [2/2] (short) (narrow) %v1550_v9, 16 }
 0x123   : > { %915 = vxpose.xlu1.b32.start [1/2] (short) (narrow) %v1552_v10, 16 }
 0x127   : > { %916 = vxpose.xlu1.b32.end [2/2] (short) (narrow) %v1548_v8, 16 }
 0x13b   : > { %819 = vperm.xlu0 %1427, %v815_v12  }
 0x13f   : > { %1117 = vperm.xlu0 %1427, %v1113_v14  }
 0x145   : > { %824 = vperm.xlu1 %1428, %v816_v15  }
 0x149   : > { %1122 = vperm.xlu1 %1428, %v1114_v16  }
 0x167   : > { %v608_v18 = vpop.permute.xlu1 %607 }
 0x168   : > { %v615_v13 = vmul.f32 %v608_v18, %v541_v19 }
 0x16b   : > { %v613_v20 = vpop.permute.xlu0 %612 }
 0x16c   : > { %v616_v21 = vmul.f32 %v613_v20, %v542_v17 }
 0x16e   : > { %1373 = vmatprep.subr.mxu0 %v616_v21  ;;  %1380 = vmatprep.subr.mxu1 %v616_v21 }
 0x16f   : > { %1374 = vmatpush3.msra.mxu0 %v616_v21  ;;  %1381 = vmatpush3.msra.mxu1 %v616_v21 }
 0x170   : > { %1375 = vmatprep.subr.mxu0 %v615_v13  ;;  %1382 = vmatprep.subr.mxu1 %v615_v13 }
 0x171   : > { %v1611_v23 = vpop.permute.xlu1 %910  ;;  %1376 = vmatpush3.msra.mxu0 %v615_v13  ;;  %1383 = vmatpush3.msra.mxu1 %v615_v13 }
 0x172   : > { %v914_v24 = vmul.f32 %v1611_v23, %v1609_v22  ;;  %1385 = vmatmul.mubr.msk.f32.vlgmr.msra.gmra.mxu1 %vm545_vm0, %v1550_v9 }
 0x173   : > { %1398 = vmatprep.mubr.msk.f32.mxu1 %vm545_vm0, %v1552_v10 }
 0x174   : > { %1387 = vmatprep.subr.mxu0 %v914_v24  ;;  %1394 = vmatprep.subr.mxu1 %v914_v24 }
 0x175   : > { %v906_v26 = vpop.permute.xlu1 %905  ;;  %1395 = vmatpush3.msra.mxu1 %v914_v24 }
 0x176   : > { %v913_v27 = vmul.f32 %v906_v26, %v1617_v25 }
 0x178   : > { %1396 = vmatprep.subr.mxu1 %v913_v27 }
 0x179   : > { %1397 = vmatpush3.msra.mxu1 %v913_v27 }
 0x17a   : > { %1399 = vmatmul.mubr.msk.f32.vlgmr.msra.gmra.mxu1 %vm545_vm0, %v1548_v8  ;;  %v1372_v8 = vpop.f32.mrf.mxu1 }
 0x17b   : > { %538 = vst.msk [vmem:[#allocation3 + $0x18] sm:$0xff] %vm347_vm1, %v1372_v8 }
 0x17c   : > { %v526_v32 = vpop.f32.mrf.mxu1 }
 0x17d   : > { %537 = vst.msk [vmem:[#allocation3 + $0x10] sm:$0xff] %vm347_vm1, %v526_v32 }
 0x182   : > { %v843_v4 = vld [vmem:[#allocation3 + $0x18] sm:$0xff] }
 0x184   : > { %v842_v7 = vld [vmem:[#allocation3 + $0x10] sm:$0xff] }
 0x18a   : > { %v633_v28 = vpop.trf.xlu0 }
 0x18b   : > { %1377 = vmatprep.mubr.msk.f32.mxu0 %vm545_vm0, %v633_v28 }
 0x18e   : > { %v634_v9 = vpop.trf.xlu0 }
 0x18f   : > { %1378 = vmatmul.mubr.msk.f32.vlgmr.msra.gmra.mxu0 %vm545_vm0, %v634_v9 }
 0x190   : > { %1388 = vmatpush3.msra.mxu0 %v914_v24 }
 0x191   : > { %1389 = vmatprep.subr.mxu0 %v913_v27 }
 0x192   : > { %1390 = vmatpush3.msra.mxu0 %v913_v27 }
 0x19f   : > { %v931_v10 = vpop.trf.xlu1 }
 0x1a0   : > { %1391 = vmatprep.mubr.msk.f32.mxu0 %vm545_vm0, %v931_v10 }
 0x1a3   : > { %v932_v29 = vpop.trf.xlu1 }
 0x1a4   : > { %1392 = vmatmul.mubr.msk.f32.vlgmr.msra.gmra.mxu0 %vm545_vm0, %v932_v29 }
 0x1b6   : > { %v820_v41 = vpop.permute.xlu0 %819 }
 0x1b7   : > { %v827_v46 = vmul.f32 %v820_v41, %v541_v19 }
 0x1ba   : > { %v1118_v61 = vpop.permute.xlu0 %1117 }
 0x1bb   : > { %v1125_v1 = vmul.f32 %v1118_v61, %v1617_v25 }
 0x1c0   : > { %v825_v37 = vpop.permute.xlu1 %824 }
 0x1c1   : > { %v828_v42 = vmul.f32 %v825_v37, %v542_v17 }
 0x1c4   : > { %v1123_v55 = vpop.permute.xlu1 %1122 }
 0x1c5   : > { %v1126_v62 = vmul.f32 %v1123_v55, %v1609_v22 }
 0x232   : > { %v1386_v33 = vpop.f32.mrf.mxu1 }
 0x234   : > { %v802_v35 = vpop.f32.mrf.mxu1 }
 0x23a   : > { %v1400_v53 = vpop.f32.mrf.mxu1 }
 0x23c   : > { %v1100_v57 = vpop.f32.mrf.mxu1 }
 0x24f   : > { %v1379_v34 = vpop.f32.mrf.mxu0 }
 0x250   : > { %v808_v36 = vadd.f32 %v1386_v33, %v1379_v34 }
 0x251   : > { %v721_v38 = vpop.f32.mrf.mxu0 }
 0x252   : > { %v812_v39 = vmul.f32 0.5, %v808_v36  ;;  %v803_v40 = vadd.f32 %v802_v35, %v721_v38 }
 0x254   : > { %v814_v43 = vmul.f32 %v812_v39, %v613_v20  ;;  %v811_v44 = vmul.f32 0.5, %v803_v40 }
 0x256   : > { %v830_v47 = vadd.f32 %v828_v42, %v814_v43  ;;  %v813_v48 = vmul.f32 %v811_v44, %v608_v18 }
 0x258   : > { %v832_v50 = vadd.f32 %v830_v47, %v544_v45  ;;  %v829_v51 = vadd.f32 %v827_v46, %v813_v48 }
 0x25a   : > { %834 = vst.msk [vmem:[%s1633_s30 + $0x8] sm:$0xff] %vm347_vm1, %v832_v50  ;;  %v831_v52 = vadd.f32 %v829_v51, %v543_v49 }
 0x25c   : > { %833 = vst.msk [vmem:[%s1633_s30] sm:$0xff] %vm347_vm1, %v831_v52 }
 0x261   : > { %v1180_v14 = vld [vmem:[%s1633_s30 + $0x8] sm:$0xff] (%p1522_p5) }
 0x262   : > { %1181 = vst [vmem:[%s1143_s8 + $0x8] sm:$0xff] (%p1522_p5), %v1180_v14 }
 0x263   : > { %v1178_v12 = vld [vmem:[%s1633_s30] sm:$0xff] (%p1522_p5) }
 0x264   : > { %v1393_v54 = vpop.f32.mrf.mxu0  ;;  %1179 = vst [vmem:[%s1143_s8] sm:$0xff] (%p1522_p5), %v1178_v12 }
 0x265   : > { %v1106_v56 = vadd.f32 %v1400_v53, %v1393_v54 }
 0x266   : > { %v1019_v58 = vpop.f32.mrf.mxu0 }
 0x267   : > { %v1110_v59 = vmul.f32 0.5, %v1106_v56  ;;  %v1101_v60 = vadd.f32 %v1100_v57, %v1019_v58 }
 0x269   : > { %v1112_v63 = vmul.f32 %v1110_v59, %v1611_v23  ;;  %v1109_v0 = vmul.f32 0.5, %v1101_v60 }
 0x26b   : > { %v1128_v2 = vadd.f32 %v1126_v62, %v1112_v63  ;;  %v1111_v3 = vmul.f32 %v1109_v0, %v906_v26 }
 0x26d   : > { %v1130_v5 = vadd.f32 %v1128_v2, %v843_v4  ;;  %v1127_v6 = vadd.f32 %v1125_v1, %v1111_v3  ;;  %1140 = sbr.rel (!%p1522_p5) target bundleno = 634 (0x27a), region = 116 }
 0x26f   : > { %1322 = vst.msk [vmem:[%s1633_s30 + $0x18] sm:$0xff] %vm347_vm1, %v1130_v5  ;;  %v1129_v11 = vadd.f32 %v1127_v6, %v842_v7 }
 0x271   : > { %1321 = vst.msk [vmem:[%s1633_s30 + $0x10] sm:$0xff] %vm347_vm1, %v1129_v11 }
 0x276   : > { %v1184_v16 = vld [vmem:[%s1633_s30 + $0x18] sm:$0xff] }
 0x277   : > { %1185 = vst [vmem:[%s1143_s8 + $0x28] sm:$0xff] %v1184_v16 }
 0x278   : > { %v1182_v15 = vld [vmem:[%s1633_s30 + $0x10] sm:$0xff] }
 0x279   : > { %1183 = vst [vmem:[%s1143_s8 + $0x20] sm:$0xff] %v1182_v15 }
 0x27a PF: > { %p11_p11 = scmp.ge.s32.totalorder %s1506_s19, 4   ;;  %s1673_s15 = smov %s1455_s16 }
 0x27b   : > { %s1674_s16 = smov %s1516_s22  ;;  %s1675_s17 = smov %s1506_s19 }
 0x27c   :  { %13 = sbr.rel (!%p11_p11) target bundleno = 2 (0x2), region = 203 }

</bundles_post_ra>
